<compile_context>
chip_gen: v5e
topology: v5e:2x2
jax: 0.10.0
libtpu: 0.0.40
codegen_flags: <defaults>
</compile_context>

<pallas_src>
import jax
import jax.numpy as jnp
from jax.experimental import pallas as pl
from jax.experimental.pallas import tpu as pltpu


def _round_up(n, m):
    return ((n + m - 1) // m) * m


def head_cls_kernel(x_ref, w1_ref, b1_ref, w2_ref, b2_ref, o_ref):
    # x_ref : (TILE_B, in_features) f32   (streamed per grid step)
    # w1_ref: (in_features, 128)    bf16  (resident)
    # b1_ref: (1, 128)              f32   (resident)
    # w2_ref: (128, 1)              f32   (qs weight column, resident)
    # b2_ref: (1, 1)                f32   (SMEM scalar)
    # o_ref : (TILE_B, 1)           f32

    # Linear(in_features -> 128): cast the streamed f32 tile to bf16 in-kernel (no extra
    # HBM pass), bf16 x bf16 on the MXU, f32 accumulation.
    x_bf16 = x_ref[...].astype(jnp.bfloat16)
    h = jnp.dot(x_bf16, w1_ref[...], preferred_element_type=jnp.float32)
    h = h + b1_ref[...]

    # LeakyReLU(negative_slope=0.1): single max (slope in (0,1)).
    h = jnp.maximum(h, 0.1 * h)

    # Dropout(p=0.4): eval-mode identity (see TODO above).

    # Linear(128 -> 1): tiny K=128, N=1 dot on the (idle) MXU; keeps VPU/XLU slots free so
    # the kernel stays DMA-bound even on v7x's higher HBM bandwidth.
    out = jnp.dot(h, w2_ref[...], preferred_element_type=jnp.float32) + b2_ref[0, 0]
    o_ref[...] = out.astype(o_ref.dtype)


def head_cls_forward(x, w1, b1, w2, b2, *, tile_b=4096):
    """Head_Cls forward (eval mode).

    x : (B, in_features) f32
    w1: (in_features, 128) f32       (= middle.weight.T)
    b1: (128,) f32                   (= middle.bias)
    w2: (128, out_features) f32      (= qs.weight.T)
    b2: (out_features,) f32          (= qs.bias)
    """
    B, in_features = x.shape
    hidden = w1.shape[1]
    out_features = w2.shape[1]
    assert out_features == 1, "kernel implements the module default out_features=1"

    # Small, resident parameters are prepared once in the wrapper (negligible traffic).
    w1_bf16 = w1.astype(jnp.bfloat16)                          # (in, 128)
    b1_2d = b1.reshape(1, hidden).astype(jnp.float32)          # (1, 128)
    w2_col = w2.reshape(hidden, out_features).astype(jnp.float32)  # (128, 1)
    b2_2d = b2.reshape(1, 1).astype(jnp.float32)               # SMEM scalar

    # Tile selection: big tiles to amortize per-step overhead; never larger than the batch.
    tile_b = min(tile_b, _round_up(B, 8))
    tile_b = max(tile_b, 8)
    # Make sure mid/large batches produce >= 2 grid steps so v7x's two TensorCores both
    # get work along the "parallel" axis.
    if B >= 512 and pl.cdiv(B, tile_b) < 2:
        tile_b = _round_up(pl.cdiv(B, 2), 8)
    grid = (pl.cdiv(B, tile_b),)

    # Scoped-VMEM budget for this tile size (double-buffered f32 x, in-kernel bf16 copy,
    # h-sized temporaries, lane-padded output buffers, resident weights, headroom).
    xbytes_tile = tile_b * in_features * 4
    vmem_needed = (
        2 * xbytes_tile                      # x double buffer (f32)
        + xbytes_tile // 2                   # in-kernel bf16 copy of the x tile
        + 8 * tile_b * hidden * 4            # h-sized f32 temporaries (generous)
        + 2 * tile_b * 128 * 4               # lane-padded (tile_b, 1) output buffers
        + 4 * in_features * hidden * 2       # resident w1 (bf16) + slack
        + (2 << 20)                          # misc headroom
    )
    vmem_limit = int(min(max(vmem_needed, 16 << 20), 56 << 20))  # <= v7x 64 MiB physical

    cost = pl.CostEstimate(
        flops=2 * B * in_features * hidden + 2 * B * hidden * out_features,
        transcendentals=0,
        bytes_accessed=(B * in_features * 4            # x (f32, read once)
                        + in_features * hidden * 2     # w1 bf16
                        + hidden * 4 * 2               # b1, w2
                        + B * out_features * 4),       # output
    )

    return pl.pallas_call(
        head_cls_kernel,
        out_shape=jax.ShapeDtypeStruct((B, out_features), jnp.float32),
        grid=grid,
        in_specs=[
            pl.BlockSpec((tile_b, in_features), lambda i: (i, 0)),            # x: streamed
            pl.BlockSpec((in_features, hidden), lambda i: (0, 0)),            # w1: resident
            pl.BlockSpec((1, hidden), lambda i: (0, 0)),                      # b1: resident
            pl.BlockSpec((hidden, out_features), lambda i: (0, 0)),           # w2 col: resident
            pl.BlockSpec((1, 1), lambda i: (0, 0), memory_space=pltpu.SMEM),  # b2 scalar
        ],
        out_specs=pl.BlockSpec((tile_b, out_features), lambda i: (i, 0)),
        compiler_params=pltpu.CompilerParams(
            dimension_semantics=("parallel",),
            vmem_limit_bytes=vmem_limit,
        ),
        cost_estimate=cost,
    )(x, w1_bf16, b1_2d, w2_col, b2_2d)


if __name__ == "__main__":
    in_features = 512
    hidden = 128
    out_features = 1
    batch = 8

    key = jax.random.PRNGKey(0)
    kx, kw1, kb1, kw2, kb2 = jax.random.split(key, 5)

    # Deterministic parameter init (mimicking nn.Linear uniform bounds).
    bound1 = 1.0 / jnp.sqrt(in_features)
    bound2 = 1.0 / jnp.sqrt(hidden)
    x = jax.random.normal(kx, (batch, in_features), dtype=jnp.float32)
    w1 = jax.random.uniform(kw1, (in_features, hidden), jnp.float32, -bound1, bound1)
    b1 = jax.random.uniform(kb1, (hidden,), jnp.float32, -bound1, bound1)
    w2 = jax.random.uniform(kw2, (hidden, out_features), jnp.float32, -bound2, bound2)
    b2 = jax.random.uniform(kb2, (out_features,), jnp.float32, -bound2, bound2)

    out = head_cls_forward(x, w1, b1, w2, b2)
    out = jax.block_until_ready(out)

    # Pure-JAX reference with the same bf16 rounding of the first matmul operands
    # (f32 accumulation); second linear stays f32 as in the kernel.
    xb = x.astype(jnp.bfloat16).astype(jnp.float32)
    w1b = w1.astype(jnp.bfloat16).astype(jnp.float32)
    h_ref = xb @ w1b + b1[None, :]
    h_ref = jnp.where(h_ref >= 0, h_ref, 0.1 * h_ref)
    ref = h_ref @ w2 + b2[None, :]

    assert out.shape == (batch, out_features)
    assert jnp.allclose(out, ref, atol=2e-3, rtol=2e-3), float(jnp.max(jnp.abs(out - ref)))

    print("KERNEL_OK")
</pallas_src>

<mosaic_0001>
module attributes {stable_mosaic.version = 11 : i64} {
  func.func @head_cls_kernel(%arg0: i32, %arg1: memref<8x512xf32, #tpu.memory_space<vmem>>, %arg2: memref<512x128xbf16, #tpu.memory_space<vmem>>, %arg3: memref<1x128xf32, #tpu.memory_space<vmem>>, %arg4: memref<128x1xf32, #tpu.memory_space<vmem>>, %arg5: memref<1x1xf32, #tpu.memory_space<smem>>, %arg6: memref<8x1xf32, #tpu.memory_space<vmem>>) attributes {dimension_semantics = [#tpu.dimension_semantics<parallel>], iteration_bounds = array<i64: 1>, scalar_prefetch = 0 : i64, scratch_operands = 0 : i64, tpu.core_type = #tpu.core_type<tc>, window_params = [{transform_indices = @transform_0, window_bounds = array<i64: 8, 512>}, {pipeline_mode = #tpu.pipeline_mode<synchronous>, transform_indices = @transform_1, window_bounds = array<i64: 512, 128>}, {pipeline_mode = #tpu.pipeline_mode<synchronous>, transform_indices = @transform_2, window_bounds = array<i64: 1, 128>}, {pipeline_mode = #tpu.pipeline_mode<synchronous>, transform_indices = @transform_3, window_bounds = array<i64: 128, 1>}, {transform_indices = @transform_4, window_bounds = array<i64: 1, 1>}, {transform_indices = @transform_5, window_bounds = array<i64: 8, 1>}]} {
    %c0 = arith.constant 0 : index
    %c0_0 = arith.constant 0 : index
    %0 = vector.load %arg1[%c0, %c0_0] : memref<8x512xf32, #tpu.memory_space<vmem>>, vector<8x512xf32>
    %1 = arith.truncf %0 : vector<8x512xf32> to vector<8x512xbf16>
    %c0_1 = arith.constant 0 : index
    %c0_2 = arith.constant 0 : index
    %2 = vector.load %arg2[%c0_1, %c0_2] : memref<512x128xbf16, #tpu.memory_space<vmem>>, vector<512x128xbf16>
    %cst = arith.constant dense<0.000000e+00> : vector<8x128xf32>
    %3 = tpu.matmul %1, %2, %cst {dimension_numbers = #tpu.dot_dimension_numbers<[1], [0], [0], [1], [0, 0, 1, 1], [], []>} : vector<8x512xbf16>, vector<512x128xbf16>, vector<8x128xf32> -> vector<8x128xf32>
    %c0_3 = arith.constant 0 : index
    %c0_4 = arith.constant 0 : index
    %4 = vector.load %arg3[%c0_3, %c0_4] : memref<1x128xf32, #tpu.memory_space<vmem>>, vector<1x128xf32>
    %5 = vector.broadcast %4 : vector<1x128xf32> to vector<8x128xf32>
    %6 = arith.addf %3, %5 : vector<8x128xf32>
    %cst_5 = arith.constant 1.000000e-01 : f32
    %7 = vector.broadcast %cst_5 : f32 to vector<8x128xf32>
    %8 = arith.mulf %7, %6 : vector<8x128xf32>
    %9 = arith.maximumf %6, %8 : vector<8x128xf32>
    %c0_6 = arith.constant 0 : index
    %c0_7 = arith.constant 0 : index
    %10 = vector.load %arg4[%c0_6, %c0_7] : memref<128x1xf32, #tpu.memory_space<vmem>>, vector<128x1xf32>
    %cst_8 = arith.constant dense<0.000000e+00> : vector<8x1xf32>
    %11 = tpu.matmul %9, %10, %cst_8 {dimension_numbers = #tpu.dot_dimension_numbers<[1], [0], [0], [1], [0, 0, 1, 1], [], []>} : vector<8x128xf32>, vector<128x1xf32>, vector<8x1xf32> -> vector<8x1xf32>
    %c0_9 = arith.constant 0 : index
    %c0_10 = arith.constant 0 : index
    %12 = memref.load %arg5[%c0_9, %c0_10] : memref<1x1xf32, #tpu.memory_space<smem>>
    %13 = vector.broadcast %12 : f32 to vector<8x1xf32>
    %14 = arith.addf %11, %13 : vector<8x1xf32>
    %c0_11 = arith.constant 0 : index
    %c0_12 = arith.constant 0 : index
    %15 = vector.load %arg6[%c0_11, %c0_12] : memref<8x1xf32, #tpu.memory_space<vmem>>, vector<8x1xf32>
    tpu.vector_store %arg6[%c0_11, %c0_12], %14 {strides = array<i32>} : memref<8x1xf32, #tpu.memory_space<vmem>>, vector<8x1xf32>,
    return
  }
  func.func @transform_0(%arg0: i32) -> (i32, i32) {
    %c0_i32 = arith.constant 0 : i32
    %c0_i32_0 = arith.constant 0 : i32
    return %arg0, %c0_i32 : i32, i32
  }
  func.func @transform_1(%arg0: i32) -> (i32, i32) {
    %c0_i32 = arith.constant 0 : i32
    %c0_i32_0 = arith.constant 0 : i32
    %c0_i32_1 = arith.constant 0 : i32
    return %c0_i32, %c0_i32_0 : i32, i32
  }
  func.func @transform_2(%arg0: i32) -> (i32, i32) {
    %c0_i32 = arith.constant 0 : i32
    %c0_i32_0 = arith.constant 0 : i32
    %c0_i32_1 = arith.constant 0 : i32
    return %c0_i32, %c0_i32_0 : i32, i32
  }
  func.func @transform_3(%arg0: i32) -> (i32, i32) {
    %c0_i32 = arith.constant 0 : i32
    %c0_i32_0 = arith.constant 0 : i32
    %c0_i32_1 = arith.constant 0 : i32
    return %c0_i32, %c0_i32_0 : i32, i32
  }
  func.func @transform_4(%arg0: i32) -> (i32, i32) {
    %c0_i32 = arith.constant 0 : i32
    %c0_i32_0 = arith.constant 0 : i32
    %c0_i32_1 = arith.constant 0 : i32
    return %c0_i32, %c0_i32_0 : i32, i32
  }
  func.func @transform_5(%arg0: i32) -> (i32, i32) {
    %c0_i32 = arith.constant 0 : i32
    %c0_i32_0 = arith.constant 0 : i32
    return %arg0, %c0_i32 : i32, i32
  }
}

</mosaic_0001>

<bundles_post_ra>
// kernel: tpu_custom_call.1
= control target key start
LH: loop header
LB: loop body
LE: loop exit
PB: predicated region body
PF: predicated region fallthrough
CT: control target
= control target key end

     0   :  { %11 = vsyncpa [#allocation4], 0  ;;  %s594_s21 = smov [#allocation3]   ;;  %s595_s23 = smov 64   ;;  %s699_s0 = inlined_call_operand.vmem [shape: f32[8,512], index: 0, kind: input, shape index: {}]   ;;  %s700_s1 = inlined_call_operand.hbm [shape: bf16[512,128], index: 1, kind: input, shape index: {}]   ;;  %s701_s2 = inlined_call_operand.vmem [shape: f32[1,128], index: 2, kind: input, shape index: {}]   ;;  %s702_s3 = inlined_call_operand.vmem [shape: f32[128,1], index: 3, kind: input, shape index: {}]   ;;  %s703_s4 = inlined_call_operand.<no memory space> [shape: f32[1,1], index: 4, kind: input, shape index: {}]   ;;  %s704_s5 = inlined_call_operand.vmem [shape: f32[8,1], index: 5, kind: output, shape index: {}]  }
   0x1   :  { %s18_s20 = sshll.u32 %s700_s1, 4  ;;  %s20_s22 = sshll.u32 %s594_s21, 4  ;;  %s19_s20 = int_to_ptr.hbm [resolvable:$true] %s18_s20  ;;  %s21_s22 = int_to_ptr.vmem [resolvable:$true] %s20_s22 }
   0x2   :  { %s596_s24 = smov 4  }
   0x3   :  { %26 = dma.hbm_to_vmem [thread:$0]  %s19_s20, 4096, %s21_s22, [#allocation4], %s595_s23, %s595_s23, %s596_s24  }
   0x4   :  { %592 = dma.done.wait [#allocation4], 4096  }
   0x5   :  { %593 = vsyncadd [#allocation4], 4294963200  ;;  %v539_v0 = vld [vmem:[#allocation3 + $0x38] sm:$0xff]  ;;  %v538_v4 = vld [vmem:[#allocation3 + $0x30] sm:$0xff]  ;;  %vm397_vm0 = vcmask 7168  }
   0x6   :  { %v547_v1 = vld [vmem:[#allocation3 + $0x78] sm:$0xff]  ;;  %305 = vmatpush.bf16.msra.mxu0 %v539_v0  ;;  %v546_v5 = vld [vmem:[#allocation3 + $0x70] sm:$0xff]  ;;  %v537_v8 = vld [vmem:[#allocation3 + $0x28] sm:$0xff] }
   0x7   :  { %v555_v2 = vld [vmem:[#allocation3 + $0xb8] sm:$0xff]  ;;  %318 = vmatpush.bf16.msra.mxu1 %v547_v1  ;;  %v554_v6 = vld [vmem:[#allocation3 + $0xb0] sm:$0xff]  ;;  %v545_v9 = vld [vmem:[#allocation3 + $0x68] sm:$0xff] }
   0x8   :  { %v563_v3 = vld [vmem:[#allocation3 + $0xf8] sm:$0xff]  ;;  %331 = vmatpush.bf16.msra.mxu2 %v555_v2  ;;  %v562_v7 = vld [vmem:[#allocation3 + $0xf0] sm:$0xff]  ;;  %v553_v10 = vld [vmem:[#allocation3 + $0xa8] sm:$0xff] }
   0x9   :  { %344 = vmatpush.bf16.msra.mxu3 %v563_v3  ;;  %v561_v11 = vld [vmem:[#allocation3 + $0xe8] sm:$0xff]  ;;  %v536_v12 = vld [vmem:[#allocation3 + $0x20] sm:$0xff]  ;;  %v535_v16 = vld [vmem:[#allocation3 + $0x18] sm:$0xff] }
   0xa   :  { %306 = vmatpush.bf16.msra.mxu0 %v538_v4  ;;  %v544_v13 = vld [vmem:[#allocation3 + $0x60] sm:$0xff]  ;;  %v543_v17 = vld [vmem:[#allocation3 + $0x58] sm:$0xff]  ;;  %v534_v20 = vld [vmem:[#allocation3 + $0x10] sm:$0xff] }
   0xb   :  { %319 = vmatpush.bf16.msra.mxu1 %v546_v5  ;;  %v552_v14 = vld [vmem:[#allocation3 + $0xa0] sm:$0xff]  ;;  %v551_v18 = vld [vmem:[#allocation3 + $0x98] sm:$0xff]  ;;  %v542_v21 = vld [vmem:[#allocation3 + $0x50] sm:$0xff] }
   0xc   :  { %332 = vmatpush.bf16.msra.mxu2 %v554_v6  ;;  %v560_v15 = vld [vmem:[#allocation3 + $0xe0] sm:$0xff]  ;;  %v559_v19 = vld [vmem:[#allocation3 + $0xd8] sm:$0xff]  ;;  %v550_v22 = vld [vmem:[#allocation3 + $0x90] sm:$0xff] }
   0xd   :  { %345 = vmatpush.bf16.msra.mxu3 %v562_v7  ;;  %v558_v23 = vld [vmem:[#allocation3 + $0xd0] sm:$0xff]  ;;  %v533_v24 = vld [vmem:[#allocation3 + $0x8] sm:$0xff]  ;;  %v532_v28 = vld [vmem:[#allocation3] sm:$0xff]  ;;  %v376_v7 = vstv %s703_s4 }
   0xe   :  { %307 = vmatpush.bf16.msra.mxu0 %v537_v8  ;;  %v541_v25 = vld [vmem:[#allocation3 + $0x48] sm:$0xff]  ;;  %v540_v29 = vld [vmem:[#allocation3 + $0x40] sm:$0xff]  ;;  %v39_v34 = vld [vmem:[%s699_s0 + $0x10] sm:$0xff] }
   0xf   :  { %320 = vmatpush.bf16.msra.mxu1 %v545_v9  ;;  %v549_v26 = vld [vmem:[#allocation3 + $0x88] sm:$0xff]  ;;  %v548_v30 = vld [vmem:[#allocation3 + $0x80] sm:$0xff]  ;;  %v40_v35 = vld [vmem:[%s699_s0 + $0x18] sm:$0xff]  ;;  %v43_v39 = vpack.c.bf16 %v39_v34, %v39_v34 }
  0x10   :  { %333 = vmatpush.bf16.msra.mxu2 %v553_v10  ;;  %v557_v27 = vld [vmem:[#allocation3 + $0xc8] sm:$0xff]  ;;  %v37_v31 = vld [vmem:[%s699_s0] sm:$0xff]  ;;  %v374_v38 = vld [vmem:[%s702_s3 + $0x78] sm:$0xff]  ;;  %v44_v40 = vpack.c.bf16 %v40_v35, %v40_v35 }
  0x11   :  { %346 = vmatpush.bf16.msra.mxu3 %v561_v11  ;;  %v38_v32 = vld [vmem:[%s699_s0 + $0x8] sm:$0xff]  ;;  %v556_v33 = vld [vmem:[#allocation3 + $0xc0] sm:$0xff]  ;;  %v41_v36 = vpack.c.bf16 %v37_v31, %v37_v31  ;;  %v373_v41 = vld [vmem:[%s702_s3 + $0x70] sm:$0xff] }
  0x12   :  { %308 = vmatpush.bf16.msra.mxu0 %v536_v12  ;;  %v42_v37 = vpack.c.bf16 %v38_v32, %v38_v32  ;;  %v372_v42 = vld [vmem:[%s702_s3 + $0x68] sm:$0xff]  ;;  %v371_v43 = vld [vmem:[%s702_s3 + $0x60] sm:$0xff]  ;;  %v370_v44 = vld [vmem:[%s702_s3 + $0x58] sm:$0xff] }
  0x13   :  { %321 = vmatpush.bf16.msra.mxu1 %v544_v13  ;;  %v369_v45 = vld [vmem:[%s702_s3 + $0x50] sm:$0xff]  ;;  %v368_v46 = vld [vmem:[%s702_s3 + $0x48] sm:$0xff]  ;;  %v367_v47 = vld [vmem:[%s702_s3 + $0x40] sm:$0xff] }
  0x14   :  { %334 = vmatpush.bf16.msra.mxu2 %v552_v14  ;;  %v366_v48 = vld [vmem:[%s702_s3 + $0x38] sm:$0xff]  ;;  %v365_v49 = vld [vmem:[%s702_s3 + $0x30] sm:$0xff]  ;;  %v364_v50 = vld [vmem:[%s702_s3 + $0x28] sm:$0xff] }
  0x15   :  { %347 = vmatpush.bf16.msra.mxu3 %v560_v15  ;;  %v363_v51 = vld [vmem:[%s702_s3 + $0x20] sm:$0xff]  ;;  %v362_v52 = vld [vmem:[%s702_s3 + $0x18] sm:$0xff]  ;;  %v361_v53 = vld [vmem:[%s702_s3 + $0x10] sm:$0xff] }
  0x16   :  { %309 = vmatpush.bf16.msra.mxu0 %v535_v16  ;;  %v360_v54 = vld [vmem:[%s702_s3 + $0x8] sm:$0xff]  ;;  %v359_v55 = vld [vmem:[%s702_s3] sm:$0xff] }
  0x17   :  { %322 = vmatpush.bf16.msra.mxu1 %v543_v17  ;;  %v567_v56 = vld [vmem:[%s701_s2] ss:$0 sm:$0xff] }
  0x18   :  { %335 = vmatpush.bf16.msra.mxu2 %v551_v18 }
  0x19   :  { %348 = vmatpush.bf16.msra.mxu3 %v559_v19 }
  0x1a   :  { %310 = vmatpush.bf16.msra.mxu0 %v534_v20 }
  0x1b   :  { %323 = vmatpush.bf16.msra.mxu1 %v542_v21 }
  0x1c   :  { %336 = vmatpush.bf16.msra.mxu2 %v550_v22 }
  0x1d   :  { %349 = vmatpush.bf16.msra.mxu3 %v558_v23 }
  0x1e   :  { %311 = vmatpush.bf16.msra.mxu0 %v533_v24 }
  0x1f   :  { %324 = vmatpush.bf16.msra.mxu1 %v541_v25 }
  0x20   :  { %337 = vmatpush.bf16.msra.mxu2 %v549_v26 }
  0x21   :  { %350 = vmatpush.bf16.msra.mxu3 %v557_v27 }
  0x22   :  { %312 = vmatpush.bf16.msra.mxu0 %v532_v28 }
  0x23   :  { %325 = vmatpush.bf16.msra.mxu1 %v540_v29 }
  0x24   :  { %338 = vmatpush.bf16.msra.mxu2 %v548_v30 }
  0x25   :  { %351 = vmatpush.bf16.msra.mxu3 %v556_v33  ;;  %313 = vmatmul.bf16.vlgmr.msra.gmra.mxu0 %v41_v36 }
  0x26   :  { %377 = vmatpush.msrb.mxu0 %v374_v38  ;;  %326 = vmatmul.bf16.vlgmr.msra.gmra.mxu1 %v42_v37 }
  0x27   :  { %339 = vmatmul.bf16.vlgmr.msra.gmra.mxu2 %v43_v39 }
  0x28   :  { %352 = vmatmul.bf16.vlgmr.msra.gmra.mxu3 %v44_v40  ;;  %378 = vmatpush.msrb.mxu0 %v373_v41 }
  0x2a   :  { %379 = vmatpush.msrb.mxu0 %v372_v42 }
  0x2c   :  { %380 = vmatpush.msrb.mxu0 %v371_v43 }
  0x2e   :  { %381 = vmatpush.msrb.mxu0 %v370_v44 }
  0x30   :  { %382 = vmatpush.msrb.mxu0 %v369_v45 }
  0x32   :  { %383 = vmatpush.msrb.mxu0 %v368_v46 }
  0x34   :  { %384 = vmatpush.msrb.mxu0 %v367_v47 }
  0x36   :  { %385 = vmatpush.msrb.mxu0 %v366_v48 }
  0x38   :  { %386 = vmatpush.msrb.mxu0 %v365_v49 }
  0x3a   :  { %387 = vmatpush.msrb.mxu0 %v364_v50 }
  0x3c   :  { %388 = vmatpush.msrb.mxu0 %v363_v51 }
  0x3e   :  { %389 = vmatpush.msrb.mxu0 %v362_v52 }
  0x40   :  { %390 = vmatpush.msrb.mxu0 %v361_v53 }
  0x42   :  { %391 = vmatpush.msrb.mxu0 %v360_v54 }
  0x44   :  { %392 = vmatpush.msrb.mxu0 %v359_v55 }
  0xa2   :  { %v314_v57 = vpop.f32.mrf.mxu0 }
  0xa3   :  { %v327_v58 = vpop.f32.mrf.mxu1  ;;  %v315_v59 = vadd.f32 %v567_v56, %v314_v57 }
  0xa5   :  { %v328_v60 = vadd.f32 %v327_v58, %v315_v59 }
  0xaa   :  { %v340_v61 = vpop.f32.mrf.mxu2  ;;  %v316_v0 = vpop.f32.mrf.mxu0 }
  0xab   :  { %v353_v62 = vpop.f32.mrf.mxu3  ;;  %v341_v63 = vadd.f32 %v340_v61, %v328_v60  ;;  %v329_v1 = vpop.f32.mrf.mxu1 }
  0xad   :  { %v354_v2 = vadd.f32 %v353_v62, %v341_v63 }
  0xaf   :  { %v357_v3 = vmul.f32 0.1, %v354_v2 }
  0xb1   :  { %v358_v4 = vmax.f32 %v354_v2, %v357_v3 }
  0xb2   :  { %v342_v5 = vpop.f32.mrf.mxu2 }
  0xb3   :  { %v355_v6 = vpop.f32.mrf.mxu3  ;;  %393 = vmatmul.f32.vlgmr.msrb.gmra.mxu0 %v358_v4 }
 0x130   :  { %v394_v8 = vpop.f32.mrf.mxu0 }
 0x131   :  { %v395_v9 = vadd.f32 %v394_v8, %v376_v7 }
 0x133   :  { %398 = vst.msk [vmem:[%s704_s5] sm:$0xff] %vm397_vm0, %v395_v9 }
 0x134   :  { %403 = vsyncpa [#allocation4], 1 }

</bundles_post_ra>
